<compile_context>
chip_gen: v5e
topology: v5e:2x2
jax: 0.10.0
libtpu: 0.0.40
codegen_flags: <defaults>
</compile_context>

<pallas_src>
import math

import jax
import jax.numpy as jnp
from jax.experimental import pallas as pl
from jax.experimental.pallas import tpu as pltpu


_LANE = 128
_SUBLANE_BY_ITEMSIZE = {4: 8, 2: 16, 1: 32}   # min sublane tile per element width


def _round_up(a: int, b: int) -> int:
    return -(-a // b) * b


def _default_tuning():
    """(block_bytes, vmem_limit_bytes) per chip generation."""
    try:
        kind = jax.devices()[0].device_kind.lower()
    except Exception:
        kind = ""
    if "v6" in kind:
        return 8 << 20, 64 << 20          # 128 MiB VMEM: big tiles amortize step overhead
    if "v5" in kind:
        return 4 << 20, 32 << 20          # already <10% step overhead at 0.8 TB/s
    return 4 << 20, 48 << 20              # v7x (64 MiB VMEM/TC) and unknown: conservative


def jumprelu(x: jax.Array, threshold: jax.Array, *,
             block_bytes: int | None = None,
             vmem_limit_bytes: int | None = None) -> jax.Array:
    """JumpReLU forward: x * (x > threshold), threshold broadcast over the last dim."""
    orig_shape = x.shape
    hidden0 = orig_shape[-1]
    assert threshold.shape == (hidden0,), "threshold must be per-feature (hidden,)"

    x_dtype = x.dtype
    cmp_dtype = jnp.promote_types(x_dtype, threshold.dtype)   # torch-style promotion for the compare
    itemsize = jnp.dtype(x_dtype).itemsize
    sub = _SUBLANE_BY_ITEMSIZE.get(itemsize, 8)

    bb_def, vl_def = _default_tuning()
    block_bytes = block_bytes or bb_def
    vmem_limit_bytes = vmem_limit_bytes or vl_def

    x2d = x.reshape(-1, hidden0)
    n_rows0 = x2d.shape[0]
    t1d = threshold.astype(cmp_dtype)

    n_rows, hidden = n_rows0, hidden0
    folded_k, pad_rows = 1, 0

    if hidden < _LANE:
        # Fold k rows into the lane axis so the last dim is a multiple of 128
        # (unmasked vst). A few padded rows are free for a mem-bound op.
        k = math.lcm(hidden, _LANE) // hidden
        pad_rows = (-n_rows) % k
        if pad_rows:
            x2d = jnp.concatenate(
                [x2d, jnp.zeros((pad_rows, hidden), x_dtype)], axis=0)
        n_rows = (n_rows + pad_rows) // k
        hidden = k * hidden
        x2d = x2d.reshape(n_rows, hidden)
        t1d = jnp.tile(t1d, k)
        folded_k = k
    elif hidden % _LANE != 0:
        # Pad the lane dim to the next multiple of 128 so every store is lane-dense.
        pad_h = (-hidden) % _LANE
        x2d = jnp.pad(x2d, ((0, 0), (0, pad_h)))
        t1d = jnp.pad(t1d, (0, pad_h))
        hidden = hidden + pad_h

    t2d = t1d.reshape(1, hidden)

    # Lane-axis tile: keep full rows (contiguous DMA) unless even `sub` rows
    # would blow the block budget (truly huge SAE widths).
    if hidden * itemsize * sub > block_bytes:
        tile_h = max(_LANE, (block_bytes // (sub * itemsize)) // _LANE * _LANE)
    else:
        tile_h = hidden
    grid_j = pl.cdiv(hidden, tile_h)

    # Row-axis tile: target ~block_bytes per buffer (double-buffered in+out is
    # ~4x tile bytes live), but never let a large tensor collapse to a single
    # row block — v7x megacore sharding needs >= 2 (ideally >= 8) grid steps.
    rows_target = _round_up(max(sub, block_bytes // (tile_h * itemsize)), sub)
    if n_rows <= rows_target:
        tile_rows = n_rows                   # full extent: legal even if not 8-aligned
    else:
        tile_rows = rows_target              # multiple of sub; ragged last block masked

    total_bytes = n_rows * hidden * itemsize
    if total_bytes > (4 << 20) and grid_j < 2:
        max_tile = max(sub, _round_up(pl.cdiv(n_rows, 8), sub))
        if max_tile < tile_rows:
            tile_rows = max_tile

    grid = (pl.cdiv(n_rows, tile_rows), grid_j)
    lane_blocked = tile_h != hidden

    def kernel(x_ref, t_ref, o_ref):
        x = x_ref[...]                                     # (tile_rows, tile_h)
        if lane_blocked:
            start = pl.multiple_of(pl.program_id(1) * tile_h, _LANE)
            t = t_ref[:, pl.ds(start, tile_h)]             # slice of resident threshold
        else:
            t = t_ref[...]                                 # (1, hidden), broadcasts over rows
        mask = x.astype(cmp_dtype) > t                     # strict >, promoted dtype
        o_ref[...] = x * mask.astype(x.dtype)              # NaN * 0 = NaN, like torch

    out = pl.pallas_call(
        kernel,
        out_shape=jax.ShapeDtypeStruct((n_rows, hidden), x_dtype),
        grid_spec=pltpu.PrefetchScalarGridSpec(
            num_scalar_prefetch=0,
            grid=grid,
            in_specs=[
                pl.BlockSpec((tile_rows, tile_h), lambda i, j: (i, j)),
                pl.BlockSpec((1, hidden), lambda i, j: (0, 0)),   # threshold fully resident
            ],
            out_specs=pl.BlockSpec((tile_rows, tile_h), lambda i, j: (i, j)),
        ),
        compiler_params=pltpu.CompilerParams(
            dimension_semantics=("parallel", "parallel"),
            vmem_limit_bytes=vmem_limit_bytes,
        ),
    )(x2d, t2d)

    # Undo wrapper-side lane folding / padding.
    if folded_k > 1:
        out = out.reshape(n_rows * folded_k, hidden0)
        if pad_rows:
            out = out[:n_rows0]
        return out.reshape(orig_shape)
    if hidden != hidden0:
        return out[:, :hidden0].reshape(orig_shape)
    return out.reshape(orig_shape)


# TODO(synk): JumpReLUFunction.backward (straight-through grad_input and the
# rectangle-window grad_threshold) is not implemented; this is forward-only.


def _ref(x, t):
    cmp = jnp.promote_types(x.dtype, t.dtype)
    mask = (x.astype(cmp) > t.astype(cmp)).astype(x.dtype)
    return x * mask


if __name__ == "__main__":
    key = jax.random.PRNGKey(0)
    ks = jax.random.split(key, 8)

    # 1) SAE-style shape: (batch, seq, hidden), narrow hidden -> lane-fold path.
    batch, seq, hidden = 2, 8, 32
    x = jax.random.normal(ks[0], (batch, seq, hidden), dtype=jnp.float32)
    thr = 0.1 * jnp.abs(jax.random.normal(ks[1], (hidden,), dtype=jnp.float32))
    out = jax.block_until_ready(jumprelu(x, thr))
    assert out.shape == x.shape and out.dtype == x.dtype
    assert jnp.allclose(out, _ref(x, thr)), "mismatch (lane-folded path)"

    # 2) 128-aligned hidden, ragged row count (masked last row block, no pad).
    x2 = jax.random.normal(ks[2], (3, 5, 256), dtype=jnp.float32)        # 15 rows
    t2 = 0.1 * jnp.abs(jax.random.normal(ks[3], (256,), dtype=jnp.float32))
    out2 = jax.block_until_ready(jumprelu(x2, t2, block_bytes=8 * 1024))
    assert jnp.allclose(out2, _ref(x2, t2)), "mismatch (ragged-row path)"

    # 3) Narrow hidden that needs row padding for the fold (h=96, k=4, 10 rows).
    x3 = jax.random.normal(ks[4], (2, 5, 96), dtype=jnp.float32)
    t3 = 0.1 * jnp.abs(jax.random.normal(ks[5], (96,), dtype=jnp.float32))
    out3 = jax.block_until_ready(jumprelu(x3, t3))
    assert jnp.allclose(out3, _ref(x3, t3)), "mismatch (padded-fold path)"

    # 4) bf16 input + f32 threshold, hidden not a multiple of 128 (lane pad path).
    x4 = jax.random.normal(ks[6], (9, 200), dtype=jnp.bfloat16)
    t4 = 0.1 * jnp.abs(jax.random.normal(ks[7], (200,), dtype=jnp.float32))
    out4 = jax.block_until_ready(jumprelu(x4, t4))
    assert out4.dtype == jnp.bfloat16
    assert jnp.allclose(out4.astype(jnp.float32), _ref(x4, t4).astype(jnp.float32)), \
        "mismatch (lane-pad / promoted-compare path)"

    print("KERNEL_OK")
</pallas_src>

<mosaic_0001>
module attributes {stable_mosaic.version = 11 : i64} {
  func.func @kernel(%arg0: i32, %arg1: i32, %arg2: memref<4x128xf32, #tpu.memory_space<vmem>>, %arg3: memref<1x128xf32, #tpu.memory_space<vmem>>, %arg4: memref<4x128xf32, #tpu.memory_space<vmem>>) attributes {dimension_semantics = [#tpu.dimension_semantics<parallel>, #tpu.dimension_semantics<parallel>], iteration_bounds = array<i64: 1, 1>, scalar_prefetch = 0 : i64, scratch_operands = 0 : i64, tpu.core_type = #tpu.core_type<tc>, window_params = [{transform_indices = @transform_0, window_bounds = array<i64: 4, 128>}, {pipeline_mode = #tpu.pipeline_mode<synchronous>, transform_indices = @transform_1, window_bounds = array<i64: 1, 128>}, {transform_indices = @transform_2, window_bounds = array<i64: 4, 128>}]} {
    %c0 = arith.constant 0 : index
    %c0_0 = arith.constant 0 : index
    %0 = vector.load %arg2[%c0, %c0_0] : memref<4x128xf32, #tpu.memory_space<vmem>>, vector<4x128xf32>
    %c0_1 = arith.constant 0 : index
    %c0_2 = arith.constant 0 : index
    %1 = vector.load %arg3[%c0_1, %c0_2] : memref<1x128xf32, #tpu.memory_space<vmem>>, vector<1x128xf32>
    %2 = vector.broadcast %1 : vector<1x128xf32> to vector<4x128xf32>
    %3 = arith.cmpf ogt, %0, %2 : vector<4x128xf32>
    %4 = arith.extui %3 : vector<4x128xi1> to vector<4x128xi32>
    %5 = arith.sitofp %4 : vector<4x128xi32> to vector<4x128xf32>
    %6 = arith.mulf %0, %5 : vector<4x128xf32>
    %c0_3 = arith.constant 0 : index
    %c0_4 = arith.constant 0 : index
    %7 = vector.load %arg4[%c0_3, %c0_4] : memref<4x128xf32, #tpu.memory_space<vmem>>, vector<4x128xf32>
    tpu.vector_store %arg4[%c0_3, %c0_4], %6 {strides = array<i32>} : memref<4x128xf32, #tpu.memory_space<vmem>>, vector<4x128xf32>,
    return
  }
  func.func @transform_0(%arg0: i32, %arg1: i32) -> (i32, i32) {
    %c0_i32 = arith.constant 0 : i32
    return %arg0, %arg1 : i32, i32
  }
  func.func @transform_1(%arg0: i32, %arg1: i32) -> (i32, i32) {
    %c0_i32 = arith.constant 0 : i32
    %c0_i32_0 = arith.constant 0 : i32
    %c0_i32_1 = arith.constant 0 : i32
    return %c0_i32, %c0_i32_0 : i32, i32
  }
  func.func @transform_2(%arg0: i32, %arg1: i32) -> (i32, i32) {
    %c0_i32 = arith.constant 0 : i32
    return %arg0, %arg1 : i32, i32
  }
}

</mosaic_0001>

<bundles_post_ra>
// kernel: tpu_custom_call.1
= control target key start
LH: loop header
LB: loop body
LE: loop exit
PB: predicated region body
PF: predicated region fallthrough
CT: control target
= control target key end

     0   :  { %7 = vsyncpa [#allocation3], 0  ;;  %s180_s0 = inlined_call_operand.hbm [shape: f32[4,128], index: 0, kind: input, shape index: {}]   ;;  %s181_s1 = inlined_call_operand.hbm [shape: f32[1,128], index: 1, kind: input, shape index: {}]   ;;  %s182_s2 = inlined_call_operand.hbm [shape: f32[4,128], index: 2, kind: output, shape index: {}]  }
   0x1   :  { %8 = vsyncpa [#allocation6], 0 }
   0x2   :  { %9 = vsyncpa [#allocation4], 0  ;;  %s15_s11 = sshll.u32 %s180_s0, 4  ;;  %s152_s12 = smov [#allocation2]   ;;  %s16_s11 = int_to_ptr.hbm [resolvable:$true] %s15_s11 }
   0x3   :  { %s17_s13 = sshll.u32 %s152_s12, 4  ;;  %s26_s16 = sshll.u32 %s181_s1, 4  ;;  %s18_s13 = int_to_ptr.vmem [resolvable:$true] %s17_s13  ;;  %s27_s16 = int_to_ptr.hbm [resolvable:$true] %s26_s16 }
   0x4   :  { %20 = dma.hbm_to_vmem [thread:$0]  %s16_s11, 64, %s18_s13, [#allocation3]  }
   0x5   :  { %s153_s17 = smov [#allocation5]  }
   0x6   :  { %s28_s18 = sshll.u32 %s153_s17, 4  ;;  %s29_s18 = int_to_ptr.vmem [resolvable:$true] %s28_s18 }
   0x7   :  { %31 = dma.hbm_to_vmem [thread:$0]  %s27_s16, 16, %s29_s18, [#allocation6]  }
   0x8   :  { %146 = dma.done.wait [#allocation3], 64  }
   0x9   :  { %147 = vsyncadd [#allocation3], 4294967232 }
   0xa   :  { %148 = dma.done.wait [#allocation6], 16  }
   0xb   :  { %149 = vsyncadd [#allocation6], 4294967280  ;;  %v40_v0 = vld [vmem:[#allocation2] sm:$0xf]  ;;  %v73_v1 = vld [vmem:[#allocation5] ss:$0 sm:$0xff] }
   0xc   :  { %s154_s0 = smov [#allocation7]   ;;  %s57_s22 = sshll.u32 %s182_s2, 4  ;;  %vm45_vm0 = vcmp.gt.f32.partialorder %v40_v0, %v73_v1  ;;  %v155_v2 = vmov 0.0   ;;  %s58_s22 = int_to_ptr.hbm [resolvable:$true] %s57_s22 }
   0xd   :  { %s55_s19 = sshll.u32 %s154_s0, 4  ;;  %v68_v3 = vsel %vm45_vm0, 1.0, %v155_v2  ;;  %s56_s19 = int_to_ptr.vmem [resolvable:$true] %s55_s19 }
   0xe   :  { %v48_v4 = vmul.f32 %v68_v3, %v40_v0 }
  0x10   :  { %49 = vst [vmem:[#allocation7] sm:$0xf] %v48_v4 }
  0x11   :  { %60 = dma.vmem_to_hbm [thread:$0]  %s56_s19, 64, %s58_s22, [#allocation4]  }
  0x12   :  { %150 = dma.done.wait [#allocation4], 64  }
  0x13   :  { %151 = vsyncadd [#allocation4], 4294967232 }
  0x14   :  { %65 = vsyncpa [#allocation3], 1 }
  0x15   :  { %66 = vsyncpa [#allocation6], 1 }
  0x16   :  { %67 = vsyncpa [#allocation4], 1 }

</bundles_post_ra>
